<compile_context>
chip_gen: v5e
topology: v5e:2x2
jax: 0.10.0
libtpu: 0.0.40
codegen_flags: <defaults>
</compile_context>

<pallas_src>
import functools

import jax
import jax.numpy as jnp
from jax.experimental import pallas as pl
from jax.experimental.pallas import tpu as pltpu


def _round_up(x, m):
    return (x + m - 1) // m * m


# ----- model dims for the example (small, lane-friendly) ---------------------
IN_DIM = 256          # input_dim  = 1*16*16 after torch.flatten(x, 1)
COND = 10             # condition_dim
HIDDEN = 128          # hidden_dim
LATENT = 16           # latent_dim

MULV = 2 * LATENT                   # 32  : fc_mu_logvar output width
MULV_PAD = _round_up(MULV, 128)     # 128 : packed [mu|logvar|0], lane-dense store
TB_MAX = 512                        # default batch rows per grid step


def cvae_kernel(x_ref, c_ref, eps_ref,
                w1x_ref, w1c_ref, b1_ref,
                wml_ref, bml_ref,
                wdz_ref, wdc_ref, bd1_ref,
                wd2_ref, bd2_ref,
                xhat_ref, mulv_ref):
    f32 = jnp.float32
    bf16 = jnp.bfloat16

    x_bf = x_ref[...].astype(bf16)
    c_bf = c_ref[...].astype(bf16)

    # encoder_input: Linear(input+cond, hidden) on cat((x, c)) as a split matmul
    # (avoids materializing the concat in HBM), + Tanh
    h = jnp.tanh(
        jnp.dot(x_bf, w1x_ref[...], preferred_element_type=f32)
        + jnp.dot(c_bf, w1c_ref[...], preferred_element_type=f32)
        + b1_ref[...])

    # fc_mu_logvar: Linear(hidden, 2*latent)  (weight/bias zero-padded to 128 lanes)
    ml = (jnp.dot(h.astype(bf16), wml_ref[...], preferred_element_type=f32)
          + bml_ref[...])
    mulv_ref[...] = ml.astype(bf16)          # packed [mu|logvar|0], full-lane bf16 store

    mu = ml[:, :LATENT]
    logvar = ml[:, LATENT:MULV]

    # reparameterize: z = mu + eps * exp(0.5 * logvar)
    z = mu + eps_ref[...] * jnp.exp(0.5 * logvar)

    # decoder_input: Linear(latent+cond, hidden) on cat((z, c)) as a split matmul, + Tanh
    d = jnp.tanh(
        jnp.dot(z.astype(bf16), wdz_ref[...], preferred_element_type=f32)
        + jnp.dot(c_bf, wdc_ref[...], preferred_element_type=f32)
        + bd1_ref[...])

    # decoder_output: Linear(hidden, input_dim)   (no output activation)
    xhat = (jnp.dot(d.astype(bf16), wd2_ref[...], preferred_element_type=f32)
            + bd2_ref[...])
    xhat_ref[...] = xhat.astype(bf16)


def init_params(key):
    """PyTorch-style uniform(+-1/sqrt(fan_in)) init; weights stored (in, out)."""
    def linear(k, fan_in, fan_out):
        kw, kb = jax.random.split(k)
        bound = 1.0 / jnp.sqrt(float(fan_in))
        w = jax.random.uniform(kw, (fan_in, fan_out), jnp.float32, -bound, bound)
        b = jax.random.uniform(kb, (1, fan_out), jnp.float32, -bound, bound)
        return w, b

    k1, k2, k3, k4 = jax.random.split(key, 4)
    w1, b1 = linear(k1, IN_DIM + COND, HIDDEN)      # encoder_input
    wml, bml = linear(k2, HIDDEN, MULV)             # fc_mu_logvar
    wd1, bd1 = linear(k3, LATENT + COND, HIDDEN)    # decoder_input
    wd2, bd2 = linear(k4, HIDDEN, IN_DIM)           # decoder_output
    return dict(w1=w1, b1=b1, w_ml=wml, b_ml=bml,
                wd1=wd1, bd1=bd1, wd2=wd2, bd2=bd2)


def _prepare_kernel_params(p):
    """bf16 MXU operands; fc_mu_logvar zero-padded to 128 lanes; biases stay f32."""
    bf16 = jnp.bfloat16
    wml = jnp.zeros((HIDDEN, MULV_PAD), bf16).at[:, :MULV].set(p["w_ml"].astype(bf16))
    bml = jnp.zeros((1, MULV_PAD), jnp.float32).at[:, :MULV].set(p["b_ml"])
    return dict(
        w1x=p["w1"][:IN_DIM].astype(bf16),
        w1c=p["w1"][IN_DIM:].astype(bf16),
        b1=p["b1"].astype(jnp.float32),
        wml=wml, bml=bml,
        wdz=p["wd1"][:LATENT].astype(bf16),
        wdc=p["wd1"][LATENT:].astype(bf16),
        bd1=p["bd1"].astype(jnp.float32),
        wd2=p["wd2"].astype(bf16),
        bd2=p["bd2"].astype(jnp.float32),
    )


def _choose_tile(B, tb_max):
    """Pick (tile, padded_batch).

    * B <= 8: one block equal to the full array dims (no padding needed).
    * otherwise: at least 2 grid steps (so v7x megacore shards the batch axis),
      capped at tb_max; batch is zero-padded only if it doesn't divide evenly.
    """
    if B <= 8:
        return B, B
    tb = min(tb_max, _round_up((B + 1) // 2, 8))
    return tb, _round_up(B, tb)


@functools.partial(jax.jit, static_argnames=("tb",))
def cvae_forward(x, c, eps, params, tb=TB_MAX):
    """x: (B,1,16,16) NCHW (anything flattening to IN_DIM); c: (B, COND); eps: (B, LATENT)."""
    B = x.shape[0]
    x_flat = x.reshape(B, -1).astype(jnp.float32)       # torch.flatten(x, start_dim=1)
    assert x_flat.shape[1] == IN_DIM and c.shape[1] == COND and eps.shape[1] == LATENT

    c_f = c.astype(jnp.float32)
    eps_f = eps.astype(jnp.float32)

    tb_eff, pB = _choose_tile(B, tb)
    if pB != B:                                          # pad only when needed (zeros are safe)
        pad = ((0, pB - B), (0, 0))
        x_flat = jnp.pad(x_flat, pad)
        c_f = jnp.pad(c_f, pad)
        eps_f = jnp.pad(eps_f, pad)

    kp = _prepare_kernel_params(params)
    grid = (pB // tb_eff,)

    row_spec = lambda feat: pl.BlockSpec((tb_eff, feat), lambda i: (i, 0))
    const_spec = lambda a: pl.BlockSpec(a.shape, lambda i: (0, 0))   # VMEM-resident weights

    weights = [kp["w1x"], kp["w1c"], kp["b1"],
               kp["wml"], kp["bml"],
               kp["wdz"], kp["wdc"], kp["bd1"],
               kp["wd2"], kp["bd2"]]
    ins = [x_flat, c_f, eps_f] + weights
    in_specs = ([row_spec(IN_DIM), row_spec(COND), row_spec(LATENT)]
                + [const_spec(a) for a in weights])

    out_shape = (jax.ShapeDtypeStruct((pB, IN_DIM), jnp.bfloat16),
                 jax.ShapeDtypeStruct((pB, MULV_PAD), jnp.bfloat16))
    out_specs = (row_spec(IN_DIM), row_spec(MULV_PAD))

    weight_bytes = sum(int(a.size) * a.dtype.itemsize for a in weights)
    act_bytes = pB * ((IN_DIM + COND + LATENT) * 4 + (IN_DIM + MULV_PAD) * 2)
    flops = 2 * pB * ((IN_DIM + COND) * HIDDEN + HIDDEN * MULV_PAD
                      + (LATENT + COND) * HIDDEN + HIDDEN * IN_DIM)
    transcendentals = pB * (2 * HIDDEN + LATENT)         # two tanh layers + exp

    x_hat_bf, mulv_bf = pl.pallas_call(
        cvae_kernel,
        grid=grid,
        in_specs=in_specs,
        out_specs=out_specs,
        out_shape=out_shape,
        compiler_params=pltpu.CompilerParams(
            dimension_semantics=("parallel",),
            vmem_limit_bytes=16 << 20),
        cost_estimate=pl.CostEstimate(
            flops=flops,
            transcendentals=transcendentals,
            bytes_accessed=weight_bytes + act_bytes),
    )(*ins)

    # slice off any padded rows, split packed [mu|logvar], restore f32 API dtype
    x_hat = x_hat_bf[:B].astype(jnp.float32)
    mu = mulv_bf[:B, :LATENT].astype(jnp.float32)
    logvar = mulv_bf[:B, LATENT:MULV].astype(jnp.float32)
    return x_hat, mu, logvar


def reference_forward(x, c, eps, p):
    """Pure-JAX reference of the same math (bf16 matmul operands, f32 accumulation)."""
    def mm(a, w):
        return jnp.dot(a.astype(jnp.bfloat16), w.astype(jnp.bfloat16),
                       preferred_element_type=jnp.float32)
    B = x.shape[0]
    xf = x.reshape(B, -1).astype(jnp.float32)
    cf = c.astype(jnp.float32)
    h = jnp.tanh(mm(xf, p["w1"][:IN_DIM]) + mm(cf, p["w1"][IN_DIM:]) + p["b1"])
    ml = mm(h, p["w_ml"]) + p["b_ml"]
    mu, logvar = ml[:, :LATENT], ml[:, LATENT:]
    z = mu + eps * jnp.exp(0.5 * logvar)
    d = jnp.tanh(mm(z, p["wd1"][:LATENT]) + mm(cf, p["wd1"][LATENT:]) + p["bd1"])
    x_hat = mm(d, p["wd2"]) + p["bd2"]
    return x_hat, mu, logvar


if __name__ == "__main__":
    key = jax.random.PRNGKey(0)
    k_param, k_x, k_c, k_eps = jax.random.split(key, 4)

    B = 2
    params = init_params(k_param)
    x = jax.random.uniform(k_x, (B, 1, 16, 16), jnp.float32)       # NCHW image
    c = jax.random.normal(k_c, (B, COND), jnp.float32)             # condition
    # eps corresponds to torch.randn_like(std) inside reparameterize; passed in
    # explicitly so the forward is deterministic.
    eps = jax.random.normal(k_eps, (B, LATENT), jnp.float32)

    x_hat, mu, logvar = cvae_forward(x, c, eps, params)
    jax.block_until_ready((x_hat, mu, logvar))

    ref_xh, ref_mu, ref_lv = reference_forward(x, c, eps, params)
    assert x_hat.shape == (B, IN_DIM) and mu.shape == (B, LATENT) and logvar.shape == (B, LATENT)
    assert jnp.allclose(mu, ref_mu, atol=3e-2, rtol=2e-2), "mu mismatch"
    assert jnp.allclose(logvar, ref_lv, atol=3e-2, rtol=2e-2), "logvar mismatch"
    assert jnp.allclose(x_hat, ref_xh, atol=3e-2, rtol=2e-2), "x_hat mismatch"

    print("KERNEL_OK")
</pallas_src>

<mosaic_0001>
module attributes {stable_mosaic.version = 11 : i64} {
  func.func @cvae_kernel(%arg0: i32, %arg1: memref<2x256xf32, #tpu.memory_space<vmem>>, %arg2: memref<2x10xf32, #tpu.memory_space<vmem>>, %arg3: memref<2x16xf32, #tpu.memory_space<vmem>>, %arg4: memref<256x128xbf16, #tpu.memory_space<vmem>>, %arg5: memref<10x128xbf16, #tpu.memory_space<vmem>>, %arg6: memref<1x128xf32, #tpu.memory_space<vmem>>, %arg7: memref<128x128xbf16, #tpu.memory_space<vmem>>, %arg8: memref<1x128xf32, #tpu.memory_space<vmem>>, %arg9: memref<16x128xbf16, #tpu.memory_space<vmem>>, %arg10: memref<10x128xbf16, #tpu.memory_space<vmem>>, %arg11: memref<1x128xf32, #tpu.memory_space<vmem>>, %arg12: memref<128x256xbf16, #tpu.memory_space<vmem>>, %arg13: memref<1x256xf32, #tpu.memory_space<vmem>>, %arg14: memref<2x256xbf16, #tpu.memory_space<vmem>>, %arg15: memref<2x128xbf16, #tpu.memory_space<vmem>>) attributes {dimension_semantics = [#tpu.dimension_semantics<parallel>], iteration_bounds = array<i64: 1>, scalar_prefetch = 0 : i64, scratch_operands = 0 : i64, tpu.core_type = #tpu.core_type<tc>, window_params = [{transform_indices = @transform_0, window_bounds = array<i64: 2, 256>}, {transform_indices = @transform_1, window_bounds = array<i64: 2, 10>}, {transform_indices = @transform_2, window_bounds = array<i64: 2, 16>}, {pipeline_mode = #tpu.pipeline_mode<synchronous>, transform_indices = @transform_3, window_bounds = array<i64: 256, 128>}, {pipeline_mode = #tpu.pipeline_mode<synchronous>, transform_indices = @transform_4, window_bounds = array<i64: 10, 128>}, {pipeline_mode = #tpu.pipeline_mode<synchronous>, transform_indices = @transform_5, window_bounds = array<i64: 1, 128>}, {pipeline_mode = #tpu.pipeline_mode<synchronous>, transform_indices = @transform_6, window_bounds = array<i64: 128, 128>}, {pipeline_mode = #tpu.pipeline_mode<synchronous>, transform_indices = @transform_7, window_bounds = array<i64: 1, 128>}, {pipeline_mode = #tpu.pipeline_mode<synchronous>, transform_indices = @transform_8, window_bounds = array<i64: 16, 128>}, {pipeline_mode = #tpu.pipeline_mode<synchronous>, transform_indices = @transform_9, window_bounds = array<i64: 10, 128>}, {pipeline_mode = #tpu.pipeline_mode<synchronous>, transform_indices = @transform_10, window_bounds = array<i64: 1, 128>}, {pipeline_mode = #tpu.pipeline_mode<synchronous>, transform_indices = @transform_11, window_bounds = array<i64: 128, 256>}, {pipeline_mode = #tpu.pipeline_mode<synchronous>, transform_indices = @transform_12, window_bounds = array<i64: 1, 256>}, {transform_indices = @transform_13, window_bounds = array<i64: 2, 256>}, {transform_indices = @transform_14, window_bounds = array<i64: 2, 128>}]} {
    %c0 = arith.constant 0 : index
    %c0_0 = arith.constant 0 : index
    %0 = vector.load %arg1[%c0, %c0_0] : memref<2x256xf32, #tpu.memory_space<vmem>>, vector<2x256xf32>
    %1 = arith.truncf %0 : vector<2x256xf32> to vector<2x256xbf16>
    %c0_1 = arith.constant 0 : index
    %c0_2 = arith.constant 0 : index
    %2 = vector.load %arg2[%c0_1, %c0_2] : memref<2x10xf32, #tpu.memory_space<vmem>>, vector<2x10xf32>
    %3 = arith.truncf %2 : vector<2x10xf32> to vector<2x10xbf16>
    %c0_3 = arith.constant 0 : index
    %c0_4 = arith.constant 0 : index
    %4 = vector.load %arg4[%c0_3, %c0_4] : memref<256x128xbf16, #tpu.memory_space<vmem>>, vector<256x128xbf16>
    %cst = arith.constant dense<0.000000e+00> : vector<2x128xf32>
    %5 = tpu.matmul %1, %4, %cst {dimension_numbers = #tpu.dot_dimension_numbers<[1], [0], [0], [1], [0, 0, 1, 1], [], []>} : vector<2x256xbf16>, vector<256x128xbf16>, vector<2x128xf32> -> vector<2x128xf32>
    %c0_5 = arith.constant 0 : index
    %c0_6 = arith.constant 0 : index
    %6 = vector.load %arg5[%c0_5, %c0_6] : memref<10x128xbf16, #tpu.memory_space<vmem>>, vector<10x128xbf16>
    %cst_7 = arith.constant dense<0.000000e+00> : vector<2x128xf32>
    %7 = tpu.matmul %3, %6, %cst_7 {dimension_numbers = #tpu.dot_dimension_numbers<[1], [0], [0], [1], [0, 0, 1, 1], [], []>} : vector<2x10xbf16>, vector<10x128xbf16>, vector<2x128xf32> -> vector<2x128xf32>
    %8 = arith.addf %5, %7 : vector<2x128xf32>
    %c0_8 = arith.constant 0 : index
    %c0_9 = arith.constant 0 : index
    %9 = vector.load %arg6[%c0_8, %c0_9] : memref<1x128xf32, #tpu.memory_space<vmem>>, vector<1x128xf32>
    %10 = vector.broadcast %9 : vector<1x128xf32> to vector<2x128xf32>
    %11 = arith.addf %8, %10 : vector<2x128xf32>
    %12 = math.tanh %11 : vector<2x128xf32>
    %13 = arith.truncf %12 : vector<2x128xf32> to vector<2x128xbf16>
    %c0_10 = arith.constant 0 : index
    %c0_11 = arith.constant 0 : index
    %14 = vector.load %arg7[%c0_10, %c0_11] : memref<128x128xbf16, #tpu.memory_space<vmem>>, vector<128x128xbf16>
    %cst_12 = arith.constant dense<0.000000e+00> : vector<2x128xf32>
    %15 = tpu.matmul %13, %14, %cst_12 {dimension_numbers = #tpu.dot_dimension_numbers<[1], [0], [0], [1], [0, 0, 1, 1], [], []>} : vector<2x128xbf16>, vector<128x128xbf16>, vector<2x128xf32> -> vector<2x128xf32>
    %c0_13 = arith.constant 0 : index
    %c0_14 = arith.constant 0 : index
    %16 = vector.load %arg8[%c0_13, %c0_14] : memref<1x128xf32, #tpu.memory_space<vmem>>, vector<1x128xf32>
    %17 = vector.broadcast %16 : vector<1x128xf32> to vector<2x128xf32>
    %18 = arith.addf %15, %17 : vector<2x128xf32>
    %19 = arith.truncf %18 : vector<2x128xf32> to vector<2x128xbf16>
    %c0_15 = arith.constant 0 : index
    %c0_16 = arith.constant 0 : index
    %20 = vector.load %arg15[%c0_15, %c0_16] : memref<2x128xbf16, #tpu.memory_space<vmem>>, vector<2x128xbf16>
    tpu.vector_store %arg15[%c0_15, %c0_16], %19 {strides = array<i32>} : memref<2x128xbf16, #tpu.memory_space<vmem>>, vector<2x128xbf16>,
    %21 = vector.extract_strided_slice %18 {offsets = [0, 0], sizes = [2, 16], strides = [1, 1]} : vector<2x128xf32> to vector<2x16xf32>
    %22 = vector.extract_strided_slice %18 {offsets = [0, 16], sizes = [2, 16], strides = [1, 1]} : vector<2x128xf32> to vector<2x16xf32>
    %c0_17 = arith.constant 0 : index
    %c0_18 = arith.constant 0 : index
    %23 = vector.load %arg3[%c0_17, %c0_18] : memref<2x16xf32, #tpu.memory_space<vmem>>, vector<2x16xf32>
    %cst_19 = arith.constant 5.000000e-01 : f32
    %24 = vector.broadcast %cst_19 : f32 to vector<2x16xf32>
    %25 = arith.mulf %24, %22 : vector<2x16xf32>
    %26 = math.exp %25 : vector<2x16xf32>
    %27 = arith.mulf %23, %26 : vector<2x16xf32>
    %28 = arith.addf %21, %27 : vector<2x16xf32>
    %29 = arith.truncf %28 : vector<2x16xf32> to vector<2x16xbf16>
    %c0_20 = arith.constant 0 : index
    %c0_21 = arith.constant 0 : index
    %30 = vector.load %arg9[%c0_20, %c0_21] : memref<16x128xbf16, #tpu.memory_space<vmem>>, vector<16x128xbf16>
    %cst_22 = arith.constant dense<0.000000e+00> : vector<2x128xf32>
    %31 = tpu.matmul %29, %30, %cst_22 {dimension_numbers = #tpu.dot_dimension_numbers<[1], [0], [0], [1], [0, 0, 1, 1], [], []>} : vector<2x16xbf16>, vector<16x128xbf16>, vector<2x128xf32> -> vector<2x128xf32>
    %c0_23 = arith.constant 0 : index
    %c0_24 = arith.constant 0 : index
    %32 = vector.load %arg10[%c0_23, %c0_24] : memref<10x128xbf16, #tpu.memory_space<vmem>>, vector<10x128xbf16>
    %cst_25 = arith.constant dense<0.000000e+00> : vector<2x128xf32>
    %33 = tpu.matmul %3, %32, %cst_25 {dimension_numbers = #tpu.dot_dimension_numbers<[1], [0], [0], [1], [0, 0, 1, 1], [], []>} : vector<2x10xbf16>, vector<10x128xbf16>, vector<2x128xf32> -> vector<2x128xf32>
    %34 = arith.addf %31, %33 : vector<2x128xf32>
    %c0_26 = arith.constant 0 : index
    %c0_27 = arith.constant 0 : index
    %35 = vector.load %arg11[%c0_26, %c0_27] : memref<1x128xf32, #tpu.memory_space<vmem>>, vector<1x128xf32>
    %36 = vector.broadcast %35 : vector<1x128xf32> to vector<2x128xf32>
    %37 = arith.addf %34, %36 : vector<2x128xf32>
    %38 = math.tanh %37 : vector<2x128xf32>
    %39 = arith.truncf %38 : vector<2x128xf32> to vector<2x128xbf16>
    %c0_28 = arith.constant 0 : index
    %c0_29 = arith.constant 0 : index
    %40 = vector.load %arg12[%c0_28, %c0_29] : memref<128x256xbf16, #tpu.memory_space<vmem>>, vector<128x256xbf16>
    %cst_30 = arith.constant dense<0.000000e+00> : vector<2x256xf32>
    %41 = tpu.matmul %39, %40, %cst_30 {dimension_numbers = #tpu.dot_dimension_numbers<[1], [0], [0], [1], [0, 0, 1, 1], [], []>} : vector<2x128xbf16>, vector<128x256xbf16>, vector<2x256xf32> -> vector<2x256xf32>
    %c0_31 = arith.constant 0 : index
    %c0_32 = arith.constant 0 : index
    %42 = vector.load %arg13[%c0_31, %c0_32] : memref<1x256xf32, #tpu.memory_space<vmem>>, vector<1x256xf32>
    %43 = vector.broadcast %42 : vector<1x256xf32> to vector<2x256xf32>
    %44 = arith.addf %41, %43 : vector<2x256xf32>
    %45 = arith.truncf %44 : vector<2x256xf32> to vector<2x256xbf16>
    %c0_33 = arith.constant 0 : index
    %c0_34 = arith.constant 0 : index
    %46 = vector.load %arg14[%c0_33, %c0_34] : memref<2x256xbf16, #tpu.memory_space<vmem>>, vector<2x256xbf16>
    tpu.vector_store %arg14[%c0_33, %c0_34], %45 {strides = array<i32>} : memref<2x256xbf16, #tpu.memory_space<vmem>>, vector<2x256xbf16>,
    return
  }
  func.func @transform_0(%arg0: i32) -> (i32, i32) {
    %c0_i32 = arith.constant 0 : i32
    %c0_i32_0 = arith.constant 0 : i32
    return %arg0, %c0_i32 : i32, i32
  }
  func.func @transform_1(%arg0: i32) -> (i32, i32) {
    %c0_i32 = arith.constant 0 : i32
    %c0_i32_0 = arith.constant 0 : i32
    return %arg0, %c0_i32 : i32, i32
  }
  func.func @transform_2(%arg0: i32) -> (i32, i32) {
    %c0_i32 = arith.constant 0 : i32
    %c0_i32_0 = arith.constant 0 : i32
    return %arg0, %c0_i32 : i32, i32
  }
  func.func @transform_3(%arg0: i32) -> (i32, i32) {
    %c0_i32 = arith.constant 0 : i32
    %c0_i32_0 = arith.constant 0 : i32
    %c0_i32_1 = arith.constant 0 : i32
    return %c0_i32, %c0_i32_0 : i32, i32
  }
  func.func @transform_4(%arg0: i32) -> (i32, i32) {
    %c0_i32 = arith.constant 0 : i32
    %c0_i32_0 = arith.constant 0 : i32
    %c0_i32_1 = arith.constant 0 : i32
    return %c0_i32, %c0_i32_0 : i32, i32
  }
  func.func @transform_5(%arg0: i32) -> (i32, i32) {
    %c0_i32 = arith.constant 0 : i32
    %c0_i32_0 = arith.constant 0 : i32
    %c0_i32_1 = arith.constant 0 : i32
    return %c0_i32, %c0_i32_0 : i32, i32
  }
  func.func @transform_6(%arg0: i32) -> (i32, i32) {
    %c0_i32 = arith.constant 0 : i32
    %c0_i32_0 = arith.constant 0 : i32
    %c0_i32_1 = arith.constant 0 : i32
    return %c0_i32, %c0_i32_0 : i32, i32
  }
  func.func @transform_7(%arg0: i32) -> (i32, i32) {
    %c0_i32 = arith.constant 0 : i32
    %c0_i32_0 = arith.constant 0 : i32
    %c0_i32_1 = arith.constant 0 : i32
    return %c0_i32, %c0_i32_0 : i32, i32
  }
  func.func @transform_8(%arg0: i32) -> (i32, i32) {
    %c0_i32 = arith.constant 0 : i32
    %c0_i32_0 = arith.constant 0 : i32
    %c0_i32_1 = arith.constant 0 : i32
    return %c0_i32, %c0_i32_0 : i32, i32
  }
  func.func @transform_9(%arg0: i32) -> (i32, i32) {
    %c0_i32 = arith.constant 0 : i32
    %c0_i32_0 = arith.constant 0 : i32
    %c0_i32_1 = arith.constant 0 : i32
    return %c0_i32, %c0_i32_0 : i32, i32
  }
  func.func @transform_10(%arg0: i32) -> (i32, i32) {
    %c0_i32 = arith.constant 0 : i32
    %c0_i32_0 = arith.constant 0 : i32
    %c0_i32_1 = arith.constant 0 : i32
    return %c0_i32, %c0_i32_0 : i32, i32
  }
  func.func @transform_11(%arg0: i32) -> (i32, i32) {
    %c0_i32 = arith.constant 0 : i32
    %c0_i32_0 = arith.constant 0 : i32
    %c0_i32_1 = arith.constant 0 : i32
    return %c0_i32, %c0_i32_0 : i32, i32
  }
  func.func @transform_12(%arg0: i32) -> (i32, i32) {
    %c0_i32 = arith.constant 0 : i32
    %c0_i32_0 = arith.constant 0 : i32
    %c0_i32_1 = arith.constant 0 : i32
    return %c0_i32, %c0_i32_0 : i32, i32
  }
  func.func @transform_13(%arg0: i32) -> (i32, i32) {
    %c0_i32 = arith.constant 0 : i32
    %c0_i32_0 = arith.constant 0 : i32
    return %arg0, %c0_i32 : i32, i32
  }
  func.func @transform_14(%arg0: i32) -> (i32, i32) {
    %c0_i32 = arith.constant 0 : i32
    %c0_i32_0 = arith.constant 0 : i32
    return %arg0, %c0_i32 : i32, i32
  }
}

</mosaic_0001>

<bundles_post_ra>
// kernel: cvae_forward.1
= control target key start
LH: loop header
LB: loop body
LE: loop exit
PB: predicated region body
PF: predicated region fallthrough
CT: control target
= control target key end

     0   :  { %vm101_vm0 = vcmask 1044480   ;;  %vm97_vm1 = vcmask 80896   ;;  %vm372_vm2 = vcmask 130048   ;;  %vm527_vm3 = vcmask 1040384   ;;  %s1063_s3 = inlined_call_operand.vmem [shape: bf16[256,128], index: 3, kind: input, shape index: {}]   ;;  %s1064_s4 = inlined_call_operand.vmem [shape: bf16[10,128], index: 4, kind: input, shape index: {}]   ;;  %s1065_s1 = inlined_call_operand.vmem [shape: f32[2,10], index: 1, kind: input, shape index: {}]   ;;  %s1066_s0 = inlined_call_operand.vmem [shape: f32[2,256], index: 0, kind: input, shape index: {}]   ;;  %s1067_s6 = inlined_call_operand.vmem [shape: bf16[128,128], index: 6, kind: input, shape index: {}]   ;;  %s1068_s5 = inlined_call_operand.vmem [shape: f32[1,128], index: 5, kind: input, shape index: {}]   ;;  %s1069_s7 = inlined_call_operand.vmem [shape: f32[1,128], index: 7, kind: input, shape index: {}]   ;;  %s1070_s9 = inlined_call_operand.vmem [shape: bf16[10,128], index: 9, kind: input, shape index: {}]   ;;  %s1071_s8 = inlined_call_operand.vmem [shape: bf16[16,128], index: 8, kind: input, shape index: {}]   ;;  %s1072_s14 = inlined_call_operand.vmem [shape: bf16[2,128], index: 14, kind: output, shape index: {1}]   ;;  %s1073_s10 = inlined_call_operand.vmem [shape: f32[1,128], index: 10, kind: input, shape index: {}]   ;;  %s1074_s11 = inlined_call_operand.vmem [shape: bf16[128,256], index: 11, kind: input, shape index: {}]   ;;  %s1075_s2 = inlined_call_operand.vmem [shape: f32[2,16], index: 2, kind: input, shape index: {}]   ;;  %s1076_s12 = inlined_call_operand.vmem [shape: f32[1,256], index: 12, kind: input, shape index: {}]   ;;  %s1077_s13 = inlined_call_operand.vmem [shape: bf16[2,256], index: 13, kind: output, shape index: {0}]  }
   0x1   :  { %v723_v0 = vld [vmem:[%s1063_s3 + $0x38] sm:$0xff]  ;;  %v722_v2 = vld [vmem:[%s1063_s3 + $0x30] sm:$0xff]  ;;  %v543_v4 = vld [vmem:[%s1064_s4] sm:$0xf] }
   0x2   :  { %v731_v1 = vld [vmem:[%s1063_s3 + $0x78] sm:$0xff]  ;;  %214 = vmatpush.bf16.msra.mxu1 %v723_v0  ;;  %v730_v3 = vld [vmem:[%s1063_s3 + $0x70] sm:$0xff]  ;;  %v732_v5 = vld [vmem:[%s1064_s4] sm:$0x10] }
   0x3   :  { %227 = vmatpush.bf16.msra.mxu2 %v731_v1  ;;  %v721_v6 = vld [vmem:[%s1063_s3 + $0x28] sm:$0xff]  ;;  %v544_v7 = vor.u32 %v732_v5, %v543_v4  ;;  %v56_v8 = vld [vmem:[%s1065_s1] sm:$0x3]  ;;  %v740_v11 = vld [vmem:[%s1067_s6 + $0x38] sm:$0xff] }
   0x4   :  { %v729_v9 = vld [vmem:[%s1063_s3 + $0x68] sm:$0xff]  ;;  %v47_v10 = vld [vmem:[%s1066_s0] sm:$0xf]  ;;  %v879_v13 = vpack.c.bf16 %v56_v8, %v56_v8  ;;  %315 = vmatpush.bf16.msra.mxu3 %v740_v11  ;;  %v739_v14 = vld [vmem:[%s1067_s6 + $0x30] sm:$0xff] }
   0x5   :  { %v103_v12 = vsel %vm101_vm0, %v544_v7, 0  ;;  %49 = vst [vmem:[#allocation1] ss:$4 sm:$0xff] %v47_v10  ;;  %v720_v15 = vld [vmem:[%s1063_s3 + $0x20] sm:$0xff]  ;;  %v719_v17 = vld [vmem:[%s1063_s3 + $0x18] sm:$0xff]  ;;  %v718_v19 = vld [vmem:[%s1063_s3 + $0x10] sm:$0xff] }
   0x6   :  { %215 = vmatpush.bf16.msra.mxu1 %v722_v2  ;;  %112 = vmatpush.bf16.msra.mxu0 %v103_v12  ;;  %v728_v16 = vld [vmem:[%s1063_s3 + $0x60] sm:$0xff]  ;;  %v727_v18 = vld [vmem:[%s1063_s3 + $0x58] sm:$0xff]  ;;  %v726_v20 = vld [vmem:[%s1063_s3 + $0x50] sm:$0xff] }
   0x7   :  { %228 = vmatpush.bf16.msra.mxu2 %v730_v3  ;;  %v717_v21 = vld [vmem:[%s1063_s3 + $0x8] sm:$0xff]  ;;  %v716_v23 = vld [vmem:[%s1063_s3] sm:$0xff]  ;;  %v736_v31 = vld [vmem:[%s1067_s6 + $0x18] sm:$0xff] }
   0x8   :  { %316 = vmatpush.bf16.msra.mxu3 %v739_v14  ;;  %v725_v22 = vld [vmem:[%s1063_s3 + $0x48] sm:$0xff]  ;;  %v724_v24 = vld [vmem:[%s1063_s3 + $0x40] sm:$0xff]  ;;  %v735_v32 = vld [vmem:[%s1067_s6 + $0x10] sm:$0xff] }
   0x9   :  { %545 = vmatmul.msk.bf16.vlgmr.msra.gmra.mxu0 %vm97_vm1, %v879_v13  ;;  %v738_v29 = vld [vmem:[%s1067_s6 + $0x28] sm:$0xff]  ;;  %v737_v30 = vld [vmem:[%s1067_s6 + $0x20] sm:$0xff]  ;;  %v710_v60 = vld [vmem:[%s1074_s11 + $0x70] sm:$0xf] }
   0xa   :  { %216 = vmatpush.bf16.msra.mxu1 %v721_v6  ;;  %v734_v34 = vld [vmem:[%s1067_s6 + $0x8] sm:$0xff]  ;;  %v733_v35 = vld [vmem:[%s1067_s6] sm:$0xff]  ;;  %v758_v61 = vld [vmem:[%s1074_s11 + $0x74] sm:$0xf0] }
   0xb   :  { %229 = vmatpush.bf16.msra.mxu2 %v729_v9  ;;  %v760_v39 = vld [vmem:[%s1068_s5] ss:$0 sm:$0xff]  ;;  %v742_v48 = vld [vmem:[%s1070_s9] sm:$0x10]  ;;  %v757_v62 = vld [vmem:[%s1074_s11 + $0x74] sm:$0xf]  ;;  %v711_v63 = vor.u32 %v758_v61, %v710_v60 }
   0xc   :  { %v50_v25 = vld.sshfl [vmem:[#allocation1] sm:$0xff pattern:$0x73625140]  ;;  %v51_v26 = vld.sshfl [vmem:[#allocation1 + $0x8] sm:$0xff pattern:$0x73625140]  ;;  %317 = vmatpush.bf16.msra.mxu3 %v738_v29 }
   0xd   :  { %v54_v27 = vpack.c.bf16 %v50_v25, %v50_v25  ;;  %v55_v28 = vpack.c.bf16 %v51_v26, %v51_v26  ;;  %v644_v47 = vld [vmem:[%s1070_s9] sm:$0xf]  ;;  %v712_v0 = vld [vmem:[%s1074_s11 + $0x78] sm:$0xf0]  ;;  %v756_v2 = vld [vmem:[%s1074_s11 + $0x64] sm:$0xf0] }
   0xe   :  { %217 = vmatpush.bf16.msra.mxu1 %v720_v15  ;;  %v645_v49 = vor.u32 %v742_v48, %v644_v47  ;;  %v741_v50 = vld [vmem:[%s1071_s8] sm:$0xff]  ;;  %s769_s8 = smov 112   ;;  %v715_v3 = vor.u32 %v757_v62, %v712_v0  ;;  %v704_v5 = vld [vmem:[%s1074_s11 + $0x68] sm:$0xf0]  ;;  %v694_v8 = vld [vmem:[%s1074_s11 + $0x50] sm:$0xf] }
   0xf   :  { %230 = vmatpush.bf16.msra.mxu2 %v728_v16  ;;  %v761_v52 = vld [vmem:[%s1069_s7] ss:$0 sm:$0xff]  ;;  %v755_v4 = vld [vmem:[%s1074_s11 + $0x64] sm:$0xf]  ;;  %v754_v9 = vld [vmem:[%s1074_s11 + $0x54] sm:$0xf0] }
  0x10   :  { %318 = vmatpush.bf16.msra.mxu3 %v737_v30  ;;  %v351_v51 = vsel %vm101_vm0, %v645_v49, 0  ;;  %v702_v1 = vld [vmem:[%s1074_s11 + $0x60] sm:$0xf]  ;;  %v707_v7 = vor.u32 %v755_v4, %v704_v5  ;;  %v753_v10 = vld [vmem:[%s1074_s11 + $0x54] sm:$0xf]  ;;  %v695_v12 = vor.u32 %v754_v9, %v694_v8 }
  0x11   :  { %360 = vmatpush.bf16.msrb.mxu0 %v351_v51  ;;  %v703_v6 = vor.u32 %v756_v2, %v702_v1  ;;  %v696_v11 = vld [vmem:[%s1074_s11 + $0x58] sm:$0xf0]  ;;  %v686_v14 = vld [vmem:[%s1074_s11 + $0x40] sm:$0xf]  ;;  %v752_v15 = vld [vmem:[%s1074_s11 + $0x44] sm:$0xf0] }
  0x12   :  { %218 = vmatpush.bf16.msra.mxu1 %v719_v17  ;;  %v751_v16 = vld [vmem:[%s1074_s11 + $0x44] sm:$0xf]  ;;  %v688_v17 = vld [vmem:[%s1074_s11 + $0x48] sm:$0xf0]  ;;  %v762_v51 = vld [vmem:[%s1073_s10] ss:$0 sm:$0xff] }
  0x13   :  { %231 = vmatpush.bf16.msra.mxu2 %v727_v18  ;;  %v743_v47 = vld [vmem:[%s1074_s11 + $0x4] sm:$0xf]  ;;  %v656_v49 = vld [vmem:[%s1074_s11 + $0x8] sm:$0xf0] }
  0x14   :  { %319 = vmatpush.bf16.msra.mxu3 %v736_v31 }
  0x15   :  { %383 = vmatpush.bf16.msra.mxu0 %v741_v50  ;;  %v659_v50 = vor.u32 %v743_v47, %v656_v49 }
  0x16   :  { %219 = vmatpush.bf16.msra.mxu1 %v718_v19  ;;  %v687_v19 = vor.u32 %v752_v15, %v686_v14 }
  0x17   :  { %232 = vmatpush.bf16.msra.mxu2 %v726_v20  ;;  %v691_v20 = vor.u32 %v751_v16, %v688_v17 }
  0x18   :  { %320 = vmatpush.bf16.msra.mxu3 %v735_v32 }
  0x19   :  { %646 = vmatmul.msk.bf16.vlgmr.msrb.gmra.mxu0 %vm97_vm1, %v879_v13  ;;  %v699_v13 = vor.u32 %v753_v10, %v696_v11 }
  0x1a   :  { %220 = vmatpush.bf16.msra.mxu1 %v717_v21  ;;  %v678_v21 = vld [vmem:[%s1074_s11 + $0x30] sm:$0xf] }
  0x1b   :  { %233 = vmatpush.bf16.msra.mxu2 %v725_v22  ;;  %v750_v22 = vld [vmem:[%s1074_s11 + $0x34] sm:$0xf0] }
  0x1c   :  { %321 = vmatpush.bf16.msra.mxu3 %v734_v34  ;;  %v679_v25 = vor.u32 %v750_v22, %v678_v21  ;;  %v748_v34 = vld [vmem:[%s1074_s11 + $0x24] sm:$0xf0] }
  0x1e   :  { %221 = vmatpush.bf16.msra.mxu1 %v716_v23  ;;  %v749_v23 = vld [vmem:[%s1074_s11 + $0x34] sm:$0xf] }
  0x1f   :  { %234 = vmatpush.bf16.msra.mxu2 %v724_v24  ;;  %v680_v24 = vld [vmem:[%s1074_s11 + $0x38] sm:$0xf0] }
  0x20   :  { %322 = vmatpush.bf16.msra.mxu3 %v733_v35  ;;  %v683_v26 = vor.u32 %v749_v23, %v680_v24  ;;  %v747_v35 = vld [vmem:[%s1074_s11 + $0x24] sm:$0xf] }
  0x21   :  { %222 = vmatmul.bf16.vlgmr.msra.gmra.mxu1 %v54_v27 }
  0x22   :  { %235 = vmatmul.bf16.vlgmr.msra.gmra.mxu2 %v55_v28  ;;  %498 = vmatpush.bf16.msrb.mxu1 %v711_v63  ;;  %v330_v28 = vld [vmem:[%s1075_s2] sm:$0x3] }
  0x23   :  { %511 = vmatpush.bf16.msrb.mxu2 %v715_v3 }
  0x26   :  { %499 = vmatpush.bf16.msrb.mxu1 %v703_v6 }
  0x27   :  { %512 = vmatpush.bf16.msrb.mxu2 %v707_v7 }
  0x2a   :  { %500 = vmatpush.bf16.msrb.mxu1 %v695_v12 }
  0x2b   :  { %513 = vmatpush.bf16.msrb.mxu2 %v699_v13 }
  0x2e   :  { %501 = vmatpush.bf16.msrb.mxu1 %v687_v19 }
  0x2f   :  { %514 = vmatpush.bf16.msrb.mxu2 %v691_v20 }
  0x32   :  { %502 = vmatpush.bf16.msrb.mxu1 %v679_v25 }
  0x33   :  { %515 = vmatpush.bf16.msrb.mxu2 %v683_v26 }
  0x86   :  { %v114_v33 = vpop.f32.mrf.mxu0 }
  0x8e   :  { %v116_v36 = vpop.f32.mrf.mxu0 }
  0x96   :  { %v362_v18 = vpop.f32.mrf.mxu0 }
  0x9e   :  { %v223_v37 = vpop.f32.mrf.mxu1  ;;  %v364_v27 = vpop.f32.mrf.mxu0 }
  0x9f   :  { %v224_v38 = vadd.f32 %v223_v37, %v114_v33  ;;  %v670_v33 = vld [vmem:[%s1074_s11 + $0x20] sm:$0xf]  ;;  %v672_v37 = vld [vmem:[%s1074_s11 + $0x28] sm:$0xf0] }
  0xa0   :  { %v671_v36 = vor.u32 %v748_v34, %v670_v33 }
  0xa2   :  { %503 = vmatpush.bf16.msrb.mxu1 %v671_v36 }
  0xa5   :  { %v236_v40 = vpop.f32.mrf.mxu2 }
  0xa6   :  { %v237_v41 = vadd.f32 %v236_v40, %v224_v38  ;;  %v225_v42 = vpop.f32.mrf.mxu1  ;;  %v675_v38 = vor.u32 %v747_v35, %v672_v37  ;;  %v746_v40 = vld [vmem:[%s1074_s11 + $0x14] sm:$0xf0] }
  0xa8   :  { %v244_v43 = vadd.f32 %v760_v39, %v237_v41  ;;  %516 = vmatpush.bf16.msrb.mxu2 %v675_v38  ;;  %v662_v39 = vld [vmem:[%s1074_s11 + $0x10] sm:$0xf]  ;;  %v745_v41 = vld [vmem:[%s1074_s11 + $0x14] sm:$0xf] }
  0xa9   :  { %v663_v42 = vor.u32 %v746_v40, %v662_v39 }
  0xaa   :  { %763 = vtanh.f32 %v244_v43  ;;  %v664_v43 = vld [vmem:[%s1074_s11 + $0x18] sm:$0xf0] }
  0xab   :  { %504 = vmatpush.bf16.msrb.mxu1 %v663_v42 }
  0xad   :  { %v238_v44 = vpop.f32.mrf.mxu2 }
  0xae   :  { %v667_v44 = vor.u32 %v745_v41, %v664_v43 }
  0xb0   :  { %v764_v45 = vpop.eup %763  ;;  %517 = vmatpush.bf16.msrb.mxu2 %v667_v44 }
  0xb1   :  { %v246_v46 = vpack.c.bf16 %v764_v45, %v764_v45  ;;  %v654_v45 = vld [vmem:[%s1074_s11] sm:$0xf] }
  0xb3   :  { %323 = vmatmul.bf16.vlgmr.msra.gmra.mxu3 %v246_v46  ;;  %v744_v46 = vld [vmem:[%s1074_s11 + $0x4] sm:$0xf0] }
  0xb4   :  { %v655_v48 = vor.u32 %v744_v46, %v654_v45  ;;  %518 = vmatpush.bf16.msrb.mxu2 %v659_v50 }
  0xb6   :  { %505 = vmatpush.bf16.msrb.mxu1 %v655_v48 }
 0x136   :  { %v324_v53 = vpop.f32.mrf.mxu3 }
 0x137   :  { %v325_v54 = vadd.f32 %v761_v52, %v324_v53 }
 0x139   :  { %v328_v55 = vpack.c.bf16 %v325_v54, %v325_v54  ;;  %v331_v56 = vmul.f32 0.5, %v325_v54 }
 0x13b   :  { %329 = vst [vmem:[%s1072_s14] sm:$0x1] %v328_v55  ;;  %v332_v57 = vmul.f32 1.442695, %v331_v56 }
 0x13d   :  { %765 = vpow2.f32 %v332_v57 }
 0x13e   :  { %v326_v58 = vpop.f32.mrf.mxu3 }
 0x13f   :  { %v412_v58 = vld [vmem:[%s1076_s12] sm:$0x3] }
 0x140   :  { %v414_v60 = vperm.slane %v412_v58, 0  ;;  %v415_v61 = vperm.slane %v412_v58, 1 }
 0x143   :  { %v766_v59 = vpop.eup %765 }
 0x144   :  { %335 = vrot.lane.b32.xlu0 %v766_v59, %s769_s8 }
 0x1b6   :  { %v336_v29 = vpop.permute.xlu0 %335 }
 0x1b7   :  { %v338_v30 = vmul.f32 %v336_v29, %v330_v28 }
 0x1b9   :  { %v339_v31 = vadd.f32 %v338_v30, %v325_v54 }
 0x1bb   :  { %v340_v32 = vpack.c.bf16 %v339_v31, %v339_v31 }
 0x1bd   :  { %651 = vmatmul.msk.bf16.vlgmr.msra.gmra.mxu0 %vm372_vm2, %v340_v32 }
 0x23a   :  { %v385_v52 = vpop.f32.mrf.mxu0 }
 0x23b   :  { %v386_v53 = vadd.f32 %v385_v52, %v362_v18 }
 0x23d   :  { %v393_v54 = vadd.f32 %v762_v51, %v386_v53 }
 0x23f   :  { %767 = vtanh.f32 %v393_v54 }
 0x242   :  { %v387_v55 = vpop.f32.mrf.mxu0 }
 0x245   :  { %v768_v56 = vpop.eup %767 }
 0x246   :  { %v395_v57 = vpack.c.bf16 %v768_v56, %v768_v56 }
 0x248   :  { %506 = vmatmul.bf16.vlgmr.msrb.gmra.mxu1 %v395_v57  ;;  %519 = vmatmul.bf16.vlgmr.msrb.gmra.mxu2 %v395_v57 }
 0x2c5   :  { %v507_v59 = vpop.f32.mrf.mxu1 }
 0x2c6   :  { %v508_v63 = vadd.f32 %v507_v59, %v414_v60 }
 0x2cb   :  { %v520_v62 = vpop.f32.mrf.mxu2 }
 0x2cc   :  { %v521_v0 = vadd.f32 %v520_v62, %v415_v61 }
 0x2cd   :  { %v509_v1 = vpop.f32.mrf.mxu1 }
 0x2ce   :  { %v524_v2 = vpack.c.bf16 %v521_v0, %v508_v63 }
 0x2d0   :  { %v526_v3 = vrot.slane %v524_v2, 3 }
 0x2d2   :  { %v530_v4 = vsel %vm527_vm3, %v524_v2, %v526_v3 }
 0x2d3   :  { %532 = vst [vmem:[%s1077_s13] sm:$0x3] %v530_v4  ;;  %v522_v5 = vpop.f32.mrf.mxu2 }

</bundles_post_ra>
